<compile_context>
chip_gen: v6e
topology: v6e:2x2x1
jax: 0.10.0
libtpu: 0.0.40
codegen_flags: <defaults>
</compile_context>

<pallas_src>
import functools

import jax
import jax.numpy as jnp
from jax.experimental import pallas as pl
from jax.experimental.pallas import tpu as pltpu

_BIG = 1.0e30  # masking sentinel; assumes distances are finite and << 1e30


def _glvq_kernel(dist_ref, data_cls_ref, proto_cls_ref, out_ref, *, eps):
    d = dist_ref[...].astype(jnp.float32)             # (P, TILE_N)
    # Label agreement via broadcast integer compare on the VPU.
    agree = proto_cls_ref[...] == data_cls_ref[...]   # (P,1)==(1,TILE_N) -> (P,TILE_N)

    big = jnp.float32(_BIG)
    # Distance to closest correct / incorrect prototype (min over prototype axis).
    d_correct = jnp.min(jnp.where(agree, d, big), axis=0, keepdims=True)    # (1,TILE_N)
    d_incorrect = jnp.min(jnp.where(agree, big, d), axis=0, keepdims=True)  # (1,TILE_N)

    out_ref[...] = (d_correct - d_incorrect) / (d_correct + d_incorrect + eps)


def glvq_loss_pallas(
    distances,
    prototype_labels,
    data_labels,
    eps=1e-8,
    target_block_bytes=4 << 20,
    distances_transposed=False,
):
    """GLVQ loss per sample.

    distances:         (N, P) float  (or (P, N) if distances_transposed=True)
    prototype_labels:  (P, C) one-hot
    data_labels:       (N, C) one-hot
    returns:           (N,)   float32
    """
    if distances_transposed:
        p, n = distances.shape
        dist_t = distances
    else:
        n, p = distances.shape
        # TODO(synk): have the producer emit (P, N) directly to avoid this one-time copy.
        dist_t = distances.T

    p2, c = prototype_labels.shape
    n2, c2 = data_labels.shape
    assert p == p2 and n == n2 and c == c2, "shape mismatch"

    # One-hot labels -> integer class ids outside the kernel (tiny work); removes
    # the (N,C)+(P,C) HBM traffic and the under-utilized one-hot matmul.
    data_cls = jnp.argmax(data_labels, axis=1).astype(jnp.int32)[None, :]        # (1, N)
    proto_cls = jnp.argmax(prototype_labels, axis=1).astype(jnp.int32)[:, None]  # (P, 1)

    # Tile over samples (lane axis): block ~ target_block_bytes, lane count a
    # multiple of 128 (or the full N for small problems -> single block).
    bytes_per_col = dist_t.dtype.itemsize * p
    tile = max(128, (int(target_block_bytes) // max(bytes_per_col, 1)) // 128 * 128)
    if tile >= n:
        tile = n
    grid = (pl.cdiv(n, tile),)
    # TODO(synk): for very large P (block > ~12 MiB even at 128 lanes), add a second
    # "arbitrary" grid axis over P with a running-min VMEM scratch.

    out = pl.pallas_call(
        functools.partial(_glvq_kernel, eps=float(eps)),
        out_shape=jax.ShapeDtypeStruct((1, n), jnp.float32),
        grid=grid,
        in_specs=[
            pl.BlockSpec((p, tile), lambda i: (0, i)),   # distances (P, TILE_N)
            pl.BlockSpec((1, tile), lambda i: (0, i)),   # sample class ids (lane-dense)
            pl.BlockSpec((p, 1), lambda i: (0, 0)),      # prototype class ids (resident)
        ],
        out_specs=pl.BlockSpec((1, tile), lambda i: (0, i)),
        compiler_params=pltpu.CompilerParams(
            dimension_semantics=("parallel",),
            vmem_limit_bytes=32 * 1024 * 1024,
        ),
    )(dist_t, data_cls, proto_cls)
    return out[0, :n]


def _glvq_loss_ref(distances, prototype_labels, data_labels, eps=1e-8):
    """Pure-JAX reference mirroring the PyTorch GLVQ implementation (global-max sentinel)."""
    max_d = jnp.max(distances) + 1.0
    agree = data_labels @ prototype_labels.T
    d_correct = jnp.min(distances + (1.0 - agree) * max_d, axis=1)
    d_incorrect = jnp.min(distances + agree * max_d, axis=1)
    return (d_correct - d_incorrect) / (d_correct + d_incorrect + eps)


if __name__ == "__main__":
    key = jax.random.PRNGKey(0)
    k_dist, k_cls, k_dist2, k_cls2 = jax.random.split(key, 4)

    num_classes = 4
    num_prototypes = 8  # two prototypes per class
    prototype_labels = jnp.concatenate(
        [jnp.eye(num_classes, dtype=jnp.float32),
         jnp.eye(num_classes, dtype=jnp.float32)],
        axis=0,
    )  # (P, C) one-hot

    # --- small case from the module spec: single full-dim block, grid=(1,) ---
    num_samples = 64
    distances = jax.random.uniform(
        k_dist, (num_samples, num_prototypes), dtype=jnp.float32
    )
    class_idx = jax.random.randint(k_cls, (num_samples,), 0, num_classes)
    data_labels = jax.nn.one_hot(class_idx, num_classes, dtype=jnp.float32)

    loss = jax.block_until_ready(
        glvq_loss_pallas(distances, prototype_labels, data_labels, eps=1e-8)
    )
    ref = _glvq_loss_ref(distances, prototype_labels, data_labels, eps=1e-8)
    assert loss.shape == (num_samples,)
    assert jnp.allclose(loss, ref, atol=1e-5, rtol=1e-5), "mismatch vs reference (small)"

    # --- tiled path with a ragged tail (forced small block): grid=(4,), tile=256 ---
    n2 = 1000
    distances2 = jax.random.uniform(k_dist2, (n2, num_prototypes), dtype=jnp.float32)
    class_idx2 = jax.random.randint(k_cls2, (n2,), 0, num_classes)
    data_labels2 = jax.nn.one_hot(class_idx2, num_classes, dtype=jnp.float32)

    loss2 = jax.block_until_ready(
        glvq_loss_pallas(distances2, prototype_labels, data_labels2,
                         eps=1e-8, target_block_bytes=8 * 1024)
    )
    ref2 = _glvq_loss_ref(distances2, prototype_labels, data_labels2, eps=1e-8)
    assert loss2.shape == (n2,)
    assert jnp.allclose(loss2, ref2, atol=1e-5, rtol=1e-5), "mismatch vs reference (tiled)"

    print("KERNEL_OK")
</pallas_src>

<mosaic_0001>
module attributes {stable_mosaic.version = 11 : i64} {
  func.func @_glvq_kernel(%arg0: i32, %arg1: memref<8x64xf32, #tpu.memory_space<vmem>>, %arg2: memref<1x64xi32, #tpu.memory_space<vmem>>, %arg3: memref<8x1xi32, #tpu.memory_space<vmem>>, %arg4: memref<1x64xf32, #tpu.memory_space<vmem>>) attributes {dimension_semantics = [#tpu.dimension_semantics<parallel>], iteration_bounds = array<i64: 1>, scalar_prefetch = 0 : i64, scratch_operands = 0 : i64, tpu.core_type = #tpu.core_type<tc>, window_params = [{transform_indices = @transform_0, window_bounds = array<i64: 8, 64>}, {transform_indices = @transform_1, window_bounds = array<i64: 1, 64>}, {pipeline_mode = #tpu.pipeline_mode<synchronous>, transform_indices = @transform_2, window_bounds = array<i64: 8, 1>}, {transform_indices = @transform_3, window_bounds = array<i64: 1, 64>}]} {
    %c0 = arith.constant 0 : index
    %c0_0 = arith.constant 0 : index
    %0 = vector.load %arg1[%c0, %c0_0] : memref<8x64xf32, #tpu.memory_space<vmem>>, vector<8x64xf32>
    %c0_1 = arith.constant 0 : index
    %c0_2 = arith.constant 0 : index
    %1 = vector.load %arg3[%c0_1, %c0_2] : memref<8x1xi32, #tpu.memory_space<vmem>>, vector<8x1xi32>
    %c0_3 = arith.constant 0 : index
    %c0_4 = arith.constant 0 : index
    %2 = vector.load %arg2[%c0_3, %c0_4] : memref<1x64xi32, #tpu.memory_space<vmem>>, vector<1x64xi32>
    %3 = vector.broadcast %1 : vector<8x1xi32> to vector<8x64xi32>
    %4 = vector.broadcast %2 : vector<1x64xi32> to vector<8x64xi32>
    %5 = arith.cmpi eq, %3, %4 : vector<8x64xi32>
    %cst = arith.constant 1.000000e+30 : f32
    %6 = vector.broadcast %cst : f32 to vector<8x64xf32>
    %7 = arith.select %5, %0, %6 : vector<8x64xi1>, vector<8x64xf32>
    %cst_5 = arith.constant dense<0x7F800000> : vector<64xf32>
    %8 = vector.multi_reduction <minimumf>, %7, %cst_5 [0] : vector<8x64xf32> to vector<64xf32>
    %9 = vector.shape_cast %8 : vector<64xf32> to vector<1x64xf32>
    %cst_6 = arith.constant 1.000000e+30 : f32
    %10 = vector.broadcast %cst_6 : f32 to vector<8x64xf32>
    %11 = arith.select %5, %10, %0 : vector<8x64xi1>, vector<8x64xf32>
    %cst_7 = arith.constant dense<0x7F800000> : vector<64xf32>
    %12 = vector.multi_reduction <minimumf>, %11, %cst_7 [0] : vector<8x64xf32> to vector<64xf32>
    %13 = vector.shape_cast %12 : vector<64xf32> to vector<1x64xf32>
    %14 = arith.subf %9, %13 : vector<1x64xf32>
    %15 = arith.addf %9, %13 : vector<1x64xf32>
    %cst_8 = arith.constant 9.99999993E-9 : f32
    %16 = vector.broadcast %cst_8 : f32 to vector<1x64xf32>
    %17 = arith.addf %15, %16 : vector<1x64xf32>
    %18 = arith.divf %14, %17 : vector<1x64xf32>
    %c0_9 = arith.constant 0 : index
    %c0_10 = arith.constant 0 : index
    %19 = vector.load %arg4[%c0_9, %c0_10] : memref<1x64xf32, #tpu.memory_space<vmem>>, vector<1x64xf32>
    tpu.vector_store %arg4[%c0_9, %c0_10], %18 {strides = array<i32>} : memref<1x64xf32, #tpu.memory_space<vmem>>, vector<1x64xf32>,
    return
  }
  func.func @transform_0(%arg0: i32) -> (i32, i32) {
    %c0_i32 = arith.constant 0 : i32
    %c0_i32_0 = arith.constant 0 : i32
    return %c0_i32, %arg0 : i32, i32
  }
  func.func @transform_1(%arg0: i32) -> (i32, i32) {
    %c0_i32 = arith.constant 0 : i32
    %c0_i32_0 = arith.constant 0 : i32
    return %c0_i32, %arg0 : i32, i32
  }
  func.func @transform_2(%arg0: i32) -> (i32, i32) {
    %c0_i32 = arith.constant 0 : i32
    %c0_i32_0 = arith.constant 0 : i32
    %c0_i32_1 = arith.constant 0 : i32
    return %c0_i32, %c0_i32_0 : i32, i32
  }
  func.func @transform_3(%arg0: i32) -> (i32, i32) {
    %c0_i32 = arith.constant 0 : i32
    %c0_i32_0 = arith.constant 0 : i32
    return %c0_i32, %arg0 : i32, i32
  }
}

</mosaic_0001>

<bundles_post_ra>
// kernel: tpu_custom_call.1
= control target key start
LH: loop header
LB: loop body
LE: loop exit
PB: predicated region body
PF: predicated region fallthrough
CT: control target
= control target key end

     0   :  { %v92_v1 = vmov 0   ;;  %s126_s0 = inlined_call_operand.vmem [shape: f32[8,64], index: 0, kind: input, shape index: {}]   ;;  %s127_s1 = inlined_call_operand.vmem [shape: s32[1,64], index: 1, kind: input, shape index: {}]   ;;  %s128_s2 = inlined_call_operand.vmem [shape: s32[8,1], index: 2, kind: input, shape index: {}]   ;;  %s129_s3 = inlined_call_operand.hbm [shape: f32[1,64], index: 3, kind: output, shape index: {}]  }
   0x1   :  { %v16_v0 = vld [vmem:[%s128_s2] sm:$0xff]  ;;  %67 = vset.pattern.permute.xlu0 %v92_v1 }
   0x2   :  { %8 = vsyncpa [#allocation3], 0  ;;  %19 = vperm.xlu0 %67, %v16_v0   ;;  %v64_v2 = vld [vmem:[%s127_s1] ss:$0 sm:$0xff]  ;;  %vm27_vm0 = vcmask 523264   ;;  %vm48_vm2 = vcmask 516096  }
   0x3   :  { %v15_v3 = vld [vmem:[%s126_s0] sm:$0xff]  ;;  %s93_s0 = smov [#allocation2]  }
   0x4   :  { %s56_s1 = sshll.u32 %s93_s0, 4  ;;  %s57_s1 = int_to_ptr.vmem [resolvable:$true] %s56_s1 }
   0x5   :  { %s70_s2 = scalar_lea.vmem %s57_s1, 16  ;;  %s74_s18 = scalar_lea.vmem %s57_s1, 32 }
   0x6   :  { %p71_p0 = scmp.ne.s32.totalorder %s57_s1, %s70_s2  ;;  %p75_p1 = scmp.lt.s32.totalorder %s57_s1, %s57_s1 }
   0x7   :  { %p76_p2 = scmp.lt.s32.totalorder %s74_s18, %s70_s2 }
   0x9   :  { %p77_p3 = por %p76_p2, %p75_p1 }
   0xb   :  { %p78_p4 = pnand %p77_p3, %p71_p0 }
  0x7d   :  { %v20_v4 = vpop.permute.xlu0 %19 }
  0x7e   :  { %vm25_vm1 = vcmp.eq.s32.totalorder %v20_v4, %v64_v2 }
  0x7f   :  { %v26_v5 = vsel %vm25_vm1, %v15_v3, 1e+30  ;;  %v35_v6 = vsel %vm25_vm1, 1e+30, %v15_v3 }
  0x80   :  { %v28_v7 = vsel %vm27_vm0, %v26_v5, inf  ;;  %v36_v8 = vsel %vm27_vm0, %v35_v6, inf }
  0x81   :  { %v29_v9 = vrot.slane %v28_v7, 4  ;;  %v37_v10 = vrot.slane %v36_v8, 4 }
  0x83   :  { %v30_v11 = vmin.f32 %v28_v7, %v29_v9  ;;  %v38_v12 = vmin.f32 %v36_v8, %v37_v10 }
  0x85   :  { %v31_v13 = vrot.slane %v30_v11, 2  ;;  %v39_v14 = vrot.slane %v38_v12, 2 }
  0x87   :  { %v32_v15 = vmin.f32 %v30_v11, %v31_v13  ;;  %v40_v16 = vmin.f32 %v38_v12, %v39_v14 }
  0x89   :  { %v33_v17 = vrot.slane %v32_v15, 1  ;;  %v41_v18 = vrot.slane %v40_v16, 1 }
  0x8b   :  { %v34_v19 = vmin.f32 %v32_v15, %v33_v17  ;;  %v42_v20 = vmin.f32 %v40_v16, %v41_v18 }
  0x8d   :  { %v44_v21 = vadd.f32 %v42_v20, %v34_v19  ;;  %v43_v23 = vsub.f32 %v34_v19, %v42_v20 }
  0x8f   :  { %v45_v22 = vadd.f32 1e-08, %v44_v21 }
  0x91   :  { %68 = vrcp.f32 %v45_v22 }
  0x9e   :  { %v69_v24 = vpop.eup %68 }
  0x9f   :  { %v47_v25 = vmul.f32 %v69_v24, %v43_v23 }
  0xa1   :  { %49 = vst.msk [vmem:[#allocation2] sm:$0x1] %vm48_vm2, %v47_v25 }
  0xa2   :  { %81 = shalt.err (!%p78_p4)
}
  0xa3   :  { %59 = dma.vmem_to_hbm [thread:$0]  %s57_s1, 16, %s129_s3, [#allocation3]  }
  0xa4   :  { %90 = dma.done.wait [#allocation3], 16  }
  0xa5   :  { %91 = vsyncadd [#allocation3], 4294967280 }
  0xa6   :  { %63 = vsyncpa [#allocation3], 1 }

</bundles_post_ra>
